<compile_context>
chip_gen: v6e
topology: v6e:2x2x1
jax: 0.10.0
libtpu: 0.0.40
codegen_flags: <defaults>
</compile_context>

<pallas_src>
import functools

import jax
import jax.numpy as jnp
from jax import lax
from jax.experimental import pallas as pl
from jax.experimental.pallas import tpu as pltpu

_EPS = 1e-12            # F.normalize default eps
_EPS_SQ = _EPS * _EPS   # clamp the sum of squares (sqrt is monotone, so
                        # rsqrt(max(ss, eps^2)) == 1 / max(sqrt(ss), eps))


def _infonce_kernel(b1_ref, b2_ref, b2t_ref, logits_ref, per_sample_ref,
                    *, inv_temperature):
    b1 = b1_ref[...].astype(jnp.float32)     # (TM, D)  rows i*TM .. i*TM+TM-1 of batch1
    b2 = b2_ref[...].astype(jnp.float32)     # (TM, D)  the same rows of batch2
    b2t = b2t_ref[...].astype(jnp.float32)   # (D,  B)  all of batch2, transposed

    # --- row-wise L2 normalization: rsqrt (EUP) + multiply (VPU), no divides ---
    inv1 = lax.rsqrt(jnp.maximum(jnp.sum(b1 * b1, axis=1, keepdims=True), _EPS_SQ))
    b1n = b1 * inv1                                                   # (TM, D)
    inv2 = lax.rsqrt(jnp.maximum(jnp.sum(b2 * b2, axis=1, keepdims=True), _EPS_SQ))
    b2n = b2 * inv2                                                   # (TM, D)
    inv2t = lax.rsqrt(jnp.maximum(jnp.sum(b2t * b2t, axis=0, keepdims=True), _EPS_SQ))
    b2nt = b2t * inv2t                                                # (D, B)

    # --- positives: aligned row-wise dot, O(TM*D); no (B,B) masked reduce ---
    pos = jnp.sum(b1n * b2n, axis=1, keepdims=True)                   # (TM, 1)

    # --- similarity tile on the MXU in its natural (TM,D)@(D,B) orientation ---
    sim = jnp.dot(b1n, b2nt,
                  preferred_element_type=jnp.float32,
                  precision=jax.lax.Precision.HIGHEST)                # (TM, B)

    tm, b_full = sim.shape
    row_start = pl.program_id(0) * tm
    grow = row_start + lax.broadcasted_iota(jnp.int32, (tm, b_full), 0)  # global row
    col = lax.broadcasted_iota(jnp.int32, (tm, b_full), 1)

    # torch layout: logits[r] = [sim[r,r], sim[r,0..r-1], sim[r,r+1..B-1]]
    #   output col k >= 1:  k <= r -> sim[r, k-1] (roll right by 1);  k > r -> sim[r, k]
    # The fused where-chain stores only the final logits tile (single vst pass).
    rolled = pltpu.roll(sim, shift=1, axis=1)          # rolled[:, k] = sim[:, k-1]
    neg = jnp.where(col <= grow, rolled, sim)
    logits = jnp.where(col == 0, pos, neg) * inv_temperature
    logits_ref[...] = logits.astype(logits_ref.dtype)

    # --- per-sample CE with label 0:  lse(row) - pos * (1/T)  (no column-0 slice) ---
    m = jnp.max(logits, axis=1, keepdims=True)
    lse = m + jnp.log(jnp.sum(jnp.exp(logits - m), axis=1, keepdims=True))
    per_sample_ref[...] = lse - pos * inv_temperature                 # (TM, 1)


def _pick_row_tile(B):
    """Largest MXU-friendly row tile dividing B; fall back to a single block."""
    for tm in (256, 128, 64, 32, 16, 8):
        if B % tm == 0:
            return tm
    return B  # block_shape == array shape satisfies the (8,128) tiling rule


def infonce(batch1, batch2, temperature):
    B, D = batch1.shape
    assert batch2.shape == (B, D)
    TM = _pick_row_tile(B)
    n_i = B // TM

    # One-time (D, B) transpose in the wrapper so the kernel's matmul never
    # transposes the RHS through the XLU.
    b2t = jnp.transpose(batch2)

    kernel = functools.partial(
        _infonce_kernel, inv_temperature=1.0 / float(temperature))

    logits, per_sample = pl.pallas_call(
        kernel,
        out_shape=(
            jax.ShapeDtypeStruct((B, B), jnp.float32),
            jax.ShapeDtypeStruct((B, 1), jnp.float32),
        ),
        grid=(n_i,),
        in_specs=[
            pl.BlockSpec((TM, D), lambda i: (i, 0)),   # batch1 row tile
            pl.BlockSpec((TM, D), lambda i: (i, 0)),   # batch2 row tile (positives)
            pl.BlockSpec((D, B), lambda i: (0, 0)),    # batch2^T (constant block -> fetched once)
        ],
        out_specs=(
            pl.BlockSpec((TM, B), lambda i: (i, 0)),   # logits row tile (lane-dense, full row)
            pl.BlockSpec((TM, 1), lambda i: (i, 0)),   # per-sample CE loss
        ),
        compiler_params=pltpu.CompilerParams(
            dimension_semantics=("parallel",),          # shard row tiles across TCs (v7x)
            vmem_limit_bytes=48 * 1024 * 1024,          # budget sized for v7x's 64 MiB VMEM
        ),
    )(batch1, batch2, b2t)

    # Tiny O(B) reduction kept in the wrapper so the grid needs no cross-tile
    # scalar accumulation (stays safe under megacore "parallel" sharding).
    loss = jnp.mean(per_sample)
    return loss, logits


def _reference(batch1, batch2, temperature):
    """Pure-JAX reference mirroring the torch module, for a sanity check."""
    eps = 1e-12
    b1 = batch1 / jnp.maximum(jnp.linalg.norm(batch1, axis=1, keepdims=True), eps)
    b2 = batch2 / jnp.maximum(jnp.linalg.norm(batch2, axis=1, keepdims=True), eps)
    sim = jnp.matmul(b1, b2.T, precision=jax.lax.Precision.HIGHEST)
    B = sim.shape[0]
    mask = jnp.eye(B, dtype=bool)
    pos = sim[mask].reshape(B, 1)
    neg = sim[~mask].reshape(B, B - 1)
    logits = jnp.concatenate([pos, neg], axis=1) / temperature
    lse = jax.scipy.special.logsumexp(logits, axis=1)
    loss = jnp.mean(lse - logits[:, 0])
    return loss, logits


if __name__ == "__main__":
    B, D = 8, 32
    temperature = 0.5
    key = jax.random.PRNGKey(0)
    k1, k2 = jax.random.split(key)
    batch1 = jax.random.normal(k1, (B, D), dtype=jnp.float32)
    batch2 = jax.random.normal(k2, (B, D), dtype=jnp.float32)

    loss, logits = infonce(batch1, batch2, temperature)
    jax.block_until_ready((loss, logits))

    ref_loss, ref_logits = _reference(batch1, batch2, temperature)
    assert jnp.allclose(logits, ref_logits, atol=2e-5, rtol=2e-5), float(
        jnp.max(jnp.abs(logits - ref_logits)))
    assert jnp.allclose(loss, ref_loss, atol=2e-5, rtol=2e-5), (
        float(loss), float(ref_loss))

    print("KERNEL_OK")
</pallas_src>

<mosaic_0001>
module attributes {stable_mosaic.version = 11 : i64} {
  func.func @_infonce_kernel(%arg0: i32, %arg1: memref<8x32xf32, #tpu.memory_space<vmem>>, %arg2: memref<8x32xf32, #tpu.memory_space<vmem>>, %arg3: memref<32x8xf32, #tpu.memory_space<vmem>>, %arg4: memref<8x8xf32, #tpu.memory_space<vmem>>, %arg5: memref<8x1xf32, #tpu.memory_space<vmem>>) attributes {dimension_semantics = [#tpu.dimension_semantics<parallel>], iteration_bounds = array<i64: 1>, scalar_prefetch = 0 : i64, scratch_operands = 0 : i64, tpu.core_type = #tpu.core_type<tc>, window_params = [{transform_indices = @transform_0, window_bounds = array<i64: 8, 32>}, {transform_indices = @transform_1, window_bounds = array<i64: 8, 32>}, {pipeline_mode = #tpu.pipeline_mode<synchronous>, transform_indices = @transform_2, window_bounds = array<i64: 32, 8>}, {transform_indices = @transform_3, window_bounds = array<i64: 8, 8>}, {transform_indices = @transform_4, window_bounds = array<i64: 8, 1>}]} {
    %c0 = arith.constant 0 : index
    %c0_0 = arith.constant 0 : index
    %0 = vector.load %arg1[%c0, %c0_0] : memref<8x32xf32, #tpu.memory_space<vmem>>, vector<8x32xf32>
    %c0_1 = arith.constant 0 : index
    %c0_2 = arith.constant 0 : index
    %1 = vector.load %arg2[%c0_1, %c0_2] : memref<8x32xf32, #tpu.memory_space<vmem>>, vector<8x32xf32>
    %c0_3 = arith.constant 0 : index
    %c0_4 = arith.constant 0 : index
    %2 = vector.load %arg3[%c0_3, %c0_4] : memref<32x8xf32, #tpu.memory_space<vmem>>, vector<32x8xf32>
    %3 = arith.mulf %0, %0 : vector<8x32xf32>
    %cst = arith.constant dense<0.000000e+00> : vector<8xf32>
    %4 = vector.multi_reduction <add>, %3, %cst [1] : vector<8x32xf32> to vector<8xf32>
    %5 = vector.shape_cast %4 : vector<8xf32> to vector<8x1xf32>
    %cst_5 = arith.constant 1.000000e-24 : f32
    %6 = vector.broadcast %cst_5 : f32 to vector<8x1xf32>
    %7 = arith.maximumf %5, %6 : vector<8x1xf32>
    %8 = math.rsqrt %7 : vector<8x1xf32>
    %9 = vector.broadcast %8 : vector<8x1xf32> to vector<8x32xf32>
    %10 = arith.mulf %0, %9 : vector<8x32xf32>
    %11 = arith.mulf %1, %1 : vector<8x32xf32>
    %cst_6 = arith.constant dense<0.000000e+00> : vector<8xf32>
    %12 = vector.multi_reduction <add>, %11, %cst_6 [1] : vector<8x32xf32> to vector<8xf32>
    %13 = vector.shape_cast %12 : vector<8xf32> to vector<8x1xf32>
    %cst_7 = arith.constant 1.000000e-24 : f32
    %14 = vector.broadcast %cst_7 : f32 to vector<8x1xf32>
    %15 = arith.maximumf %13, %14 : vector<8x1xf32>
    %16 = math.rsqrt %15 : vector<8x1xf32>
    %17 = vector.broadcast %16 : vector<8x1xf32> to vector<8x32xf32>
    %18 = arith.mulf %1, %17 : vector<8x32xf32>
    %19 = arith.mulf %2, %2 : vector<32x8xf32>
    %cst_8 = arith.constant dense<0.000000e+00> : vector<8xf32>
    %20 = vector.multi_reduction <add>, %19, %cst_8 [0] : vector<32x8xf32> to vector<8xf32>
    %21 = vector.shape_cast %20 : vector<8xf32> to vector<1x8xf32>
    %cst_9 = arith.constant 1.000000e-24 : f32
    %22 = vector.broadcast %cst_9 : f32 to vector<1x8xf32>
    %23 = arith.maximumf %21, %22 : vector<1x8xf32>
    %24 = math.rsqrt %23 : vector<1x8xf32>
    %25 = vector.broadcast %24 : vector<1x8xf32> to vector<32x8xf32>
    %26 = arith.mulf %2, %25 : vector<32x8xf32>
    %27 = arith.mulf %10, %18 : vector<8x32xf32>
    %cst_10 = arith.constant dense<0.000000e+00> : vector<8xf32>
    %28 = vector.multi_reduction <add>, %27, %cst_10 [1] : vector<8x32xf32> to vector<8xf32>
    %29 = vector.shape_cast %28 : vector<8xf32> to vector<8x1xf32>
    %cst_11 = arith.constant dense<0.000000e+00> : vector<8x8xf32>
    %30 = tpu.matmul %10, %26, %cst_11 {dimension_numbers = #tpu.dot_dimension_numbers<[1], [0], [0], [1], [0, 0, 1, 1], [], []>, precision = #tpu.contract_precision<fp32>} : vector<8x32xf32>, vector<32x8xf32>, vector<8x8xf32> -> vector<8x8xf32>
    %c8_i32 = arith.constant 8 : i32
    %31 = arith.muli %arg0, %c8_i32 : i32
    %32 = tpu.iota {dimensions = array<i32: 0>} : vector<8x8xi32>
    %33 = vector.broadcast %31 : i32 to vector<8x8xi32>
    %34 = arith.addi %33, %32 : vector<8x8xi32>
    %35 = tpu.iota {dimensions = array<i32: 1>} : vector<8x8xi32>
    %c1_i32 = arith.constant 1 : i32
    %36 = tpu.dynamic_rotate %30 by %c1_i32 dim 1 : vector<8x8xf32>, i32 -> vector<8x8xf32>
    %37 = arith.cmpi sle, %35, %34 : vector<8x8xi32>
    %38 = arith.select %37, %36, %30 : vector<8x8xi1>, vector<8x8xf32>
    %c0_i32 = arith.constant 0 : i32
    %39 = vector.broadcast %c0_i32 : i32 to vector<8x8xi32>
    %40 = arith.cmpi eq, %35, %39 : vector<8x8xi32>
    %41 = vector.shape_cast %29 : vector<8x1xf32> to vector<8x1xf32>
    %42 = vector.broadcast %41 : vector<8x1xf32> to vector<8x8xf32>
    %43 = arith.select %40, %42, %38 : vector<8x8xi1>, vector<8x8xf32>
    %cst_12 = arith.constant 2.000000e+00 : f32
    %44 = vector.broadcast %cst_12 : f32 to vector<8x8xf32>
    %45 = arith.mulf %43, %44 : vector<8x8xf32>
    %c0_13 = arith.constant 0 : index
    %c0_14 = arith.constant 0 : index
    %46 = vector.load %arg4[%c0_13, %c0_14] : memref<8x8xf32, #tpu.memory_space<vmem>>, vector<8x8xf32>
    tpu.vector_store %arg4[%c0_13, %c0_14], %45 {strides = array<i32>} : memref<8x8xf32, #tpu.memory_space<vmem>>, vector<8x8xf32>,
    %cst_15 = arith.constant dense<0xFF800000> : vector<8xf32>
    %47 = vector.multi_reduction <maximumf>, %45, %cst_15 [1] : vector<8x8xf32> to vector<8xf32>
    %48 = vector.shape_cast %47 : vector<8xf32> to vector<8x1xf32>
    %49 = vector.broadcast %48 : vector<8x1xf32> to vector<8x8xf32>
    %50 = arith.subf %45, %49 : vector<8x8xf32>
    %51 = math.exp %50 : vector<8x8xf32>
    %cst_16 = arith.constant dense<0.000000e+00> : vector<8xf32>
    %52 = vector.multi_reduction <add>, %51, %cst_16 [1] : vector<8x8xf32> to vector<8xf32>
    %53 = vector.shape_cast %52 : vector<8xf32> to vector<8x1xf32>
    %54 = math.log %53 : vector<8x1xf32>
    %55 = arith.addf %48, %54 : vector<8x1xf32>
    %cst_17 = arith.constant 2.000000e+00 : f32
    %56 = vector.broadcast %cst_17 : f32 to vector<8x1xf32>
    %57 = arith.mulf %29, %56 : vector<8x1xf32>
    %58 = arith.subf %55, %57 : vector<8x1xf32>
    %c0_18 = arith.constant 0 : index
    %c0_19 = arith.constant 0 : index
    %59 = vector.load %arg5[%c0_18, %c0_19] : memref<8x1xf32, #tpu.memory_space<vmem>>, vector<8x1xf32>
    tpu.vector_store %arg5[%c0_18, %c0_19], %58 {strides = array<i32>} : memref<8x1xf32, #tpu.memory_space<vmem>>, vector<8x1xf32>,
    return
  }
  func.func @transform_0(%arg0: i32) -> (i32, i32) {
    %c0_i32 = arith.constant 0 : i32
    %c0_i32_0 = arith.constant 0 : i32
    return %arg0, %c0_i32 : i32, i32
  }
  func.func @transform_1(%arg0: i32) -> (i32, i32) {
    %c0_i32 = arith.constant 0 : i32
    %c0_i32_0 = arith.constant 0 : i32
    return %arg0, %c0_i32 : i32, i32
  }
  func.func @transform_2(%arg0: i32) -> (i32, i32) {
    %c0_i32 = arith.constant 0 : i32
    %c0_i32_0 = arith.constant 0 : i32
    %c0_i32_1 = arith.constant 0 : i32
    return %c0_i32, %c0_i32_0 : i32, i32
  }
  func.func @transform_3(%arg0: i32) -> (i32, i32) {
    %c0_i32 = arith.constant 0 : i32
    %c0_i32_0 = arith.constant 0 : i32
    return %arg0, %c0_i32 : i32, i32
  }
  func.func @transform_4(%arg0: i32) -> (i32, i32) {
    %c0_i32 = arith.constant 0 : i32
    %c0_i32_0 = arith.constant 0 : i32
    return %arg0, %c0_i32 : i32, i32
  }
}

</mosaic_0001>

<bundles_post_ra>
// kernel: tpu_custom_call.1
= control target key start
LH: loop header
LB: loop body
LE: loop exit
PB: predicated region body
PF: predicated region fallthrough
CT: control target
= control target key end

     0   :  { %vm24_vm0 = vcmask 261120   ;;  %vm42_vm1 = vcmask 64512   ;;  %s908_s0 = inlined_call_operand.vmem [shape: f32[8,32], index: 0, kind: input, shape index: {}]   ;;  %s909_s1 = inlined_call_operand.vmem [shape: f32[8,32], index: 1, kind: input, shape index: {}]   ;;  %s910_s2 = inlined_call_operand.vmem [shape: f32[32,8], index: 2, kind: input, shape index: {}]   ;;  %s911_s3 = inlined_call_operand.hbm [shape: f32[8,8], index: 3, kind: output, shape index: {0}]   ;;  %s912_s4 = inlined_call_operand.vmem [shape: f32[8,1], index: 4, kind: output, shape index: {1}]  }
   0x1   :  { %v778_v0 = vld [vmem:[%s909_s1] sm:$0xff]  ;;  %v20_v5 = vld [vmem:[%s910_s2 + $0x8] sm:$0xff]  ;;  %v21_v6 = vld [vmem:[%s910_s2 + $0x10] sm:$0xff] }
   0x2   :  { %v783_v1 = vld [vmem:[%s908_s0] sm:$0xff]  ;;  %v31_v3 = vmul.f32 %v778_v0, %v778_v0  ;;  %v22_v7 = vld [vmem:[%s910_s2 + $0x18] sm:$0xff]  ;;  %v39_v9 = vmul.f32 %v20_v5, %v20_v5  ;;  %v40_v10 = vmul.f32 %v21_v6, %v21_v6 }
   0x3   :  { %v19_v2 = vld [vmem:[%s910_s2] sm:$0xff]  ;;  %v23_v4 = vmul.f32 %v783_v1, %v783_v1  ;;  %v41_v11 = vmul.f32 %v22_v7, %v22_v7 }
   0x4   :  { %v38_v8 = vmul.f32 %v19_v2, %v19_v2 }
   0x5   :  { %10 = vsyncpa [#allocation3], 0  ;;  %v32_v12 = vsel %vm24_vm0, %v31_v3, 0.0  ;;  %v25_v13 = vsel %vm24_vm0, %v23_v4, 0.0  ;;  %v44_v15 = vsel %vm42_vm1, %v39_v9, 0.0  ;;  %v46_v16 = vsel %vm42_vm1, %v40_v10, 0.0 }
   0x6   :  { %v43_v14 = vsel %vm42_vm1, %v38_v8, 0.0  ;;  %33 = vadd.xlane.f32.xlu1 %v32_v12  ;;  %26 = vadd.xlane.f32.xlu0 %v25_v13  ;;  %v48_v18 = vsel %vm42_vm1, %v41_v11, 0.0  ;;  %v745_v25 = vmov 0.0   ;;  %vm746_vm2 = vmmov 0   ;;  %s747_s2 = smov 8   ;;  %s748_s25 = smov 121  }
   0x7   :  { %v45_v17 = vadd.f32 %v44_v15, %v43_v14  ;;  %653 = vmatprep.subr.mxu1 %v745_v25  ;;  %642 = vmatprep.subr.mxu0 %v745_v25  ;;  %vm561_vm3 = vcmask 1047616   ;;  %s749_s26 = smov [#allocation2]  }
   0x8   :  { %661 = vmatprep.mubr.msk.f32.mxu1 %vm746_vm2, %v745_v25  ;;  %650 = vmatprep.mubr.msk.f32.mxu0 %vm746_vm2, %v745_v25  ;;  %s600_s27 = sshll.u32 %s749_s26, 4  ;;  %s601_s27 = int_to_ptr.vmem [resolvable:$true] %s600_s27 }
   0x9   :  { %v47_v19 = vadd.f32 %v46_v16, %v45_v17  ;;  %s723_s28 = scalar_lea.vmem %s601_s27, 128  ;;  %p728_p1 = scmp.lt.s32.totalorder %s601_s27, %s601_s27 }
   0xa   :  { %p724_p0 = scmp.ne.s32.totalorder %s601_s27, %s723_s28  ;;  %p729_p2 = scmp.lt.s32.totalorder %s723_s28, %s723_s28 }
   0xb   :  { %v49_v20 = vadd.f32 %v48_v18, %v47_v19 }
   0xc   :  { %p730_p3 = por %p729_p2, %p728_p1 }
   0xd   :  { %v50_v21 = vrot.slane %v49_v20, 4 }
   0xe   :  { %p731_p4 = pnand %p730_p3, %p724_p0 }
   0xf   :  { %v51_v22 = vadd.f32 %v50_v21, %v49_v20 }
  0x11   :  { %v52_v23 = vrot.slane %v51_v22, 2 }
  0x13   :  { %v53_v24 = vadd.f32 %v52_v23, %v51_v22 }
  0x15   :  { %v54_v26 = vrot.slane %v53_v24, 1 }
  0x17   :  { %v55_v27 = vadd.f32 %v54_v26, %v53_v24 }
  0x19   :  { %v56_v28 = vmax.f32 %v55_v27, 1e-24 }
  0x1b   :  { %713 = vrsqrt.f32 %v56_v28  ;;  %v555_v28 = vlaneseq }
  0x28   :  { %v714_v29 = vpop.eup %713 }
  0x29   :  { %v61_v30 = vmul.f32 %v714_v29, %v22_v7  ;;  %v60_v31 = vmul.f32 %v714_v29, %v21_v6  ;;  %v59_v32 = vmul.f32 %v714_v29, %v20_v5  ;;  %v58_v33 = vmul.f32 %v714_v29, %v19_v2 }
  0x2a   :  { %v556_v29 = vshrl.u32 %v555_v28, 7 }
  0x2b   :  { %v94_v34 = vand.u32 4294901760, %v61_v30  ;;  %v97_v35 = vand.u32 4294901760, %v60_v31  ;;  %v813_v36 = vand.u32 4294901760, %v59_v32  ;;  %v815_v37 = vand.u32 4294901760, %v58_v33 }
  0x2d   :  { %v817_v38 = vsub.f32 %v61_v30, %v94_v34  ;;  %v819_v39 = vsub.f32 %v60_v31, %v97_v35  ;;  %v822_v40 = vsub.f32 %v59_v32, %v813_v36  ;;  %v825_v41 = vsub.f32 %v58_v33, %v815_v37  ;;  %643 = vmatpush3.msra.mxu0 %v94_v34 }
  0x2e   :  { %644 = vmatprep.subr.mxu0 %v745_v25  ;;  %v560_v30 = vand.u32 127, %v555_v28 }
  0x2f   :  { %v175_v42 = vand.u32 4294901760, %v817_v38  ;;  %v182_v43 = vand.u32 4294901760, %v819_v39  ;;  %v189_v44 = vand.u32 4294901760, %v822_v40  ;;  %v196_v45 = vand.u32 4294901760, %v825_v41  ;;  %645 = vmatpush3.msra.mxu0 %v97_v35 }
  0x30   :  { %646 = vmatprep.subr.mxu0 %v745_v25  ;;  %vm568_vm4 = vcmp.le.s32.totalorder %v560_v30, %v556_v29  ;;  %vm574_vm5 = vcmp.eq.s32.totalorder %v560_v30, 0 }
  0x31   :  { %v176_v46 = vsub.f32 %v817_v38, %v175_v42  ;;  %v183_v47 = vsub.f32 %v819_v39, %v182_v43  ;;  %v190_v48 = vsub.f32 %v822_v40, %v189_v44  ;;  %647 = vmatpush3.msra.mxu0 %v813_v36  ;;  %v197_v51 = vsub.f32 %v825_v41, %v196_v45 }
  0x32   :  { %648 = vmatprep.subr.mxu0 %v745_v25 }
  0x33   :  { %v177_v49 = vand.u32 4294901760, %v176_v46  ;;  %v184_v50 = vand.u32 4294901760, %v183_v47  ;;  %649 = vmatpush3.msra.mxu0 %v815_v37  ;;  %v191_v52 = vand.u32 4294901760, %v190_v48  ;;  %v198_v53 = vand.u32 4294901760, %v197_v51 }
  0x34   :  { %664 = vmatprep.subr.mxu0 %v745_v25 }
  0x35   :  { %654 = vmatpush3.msra.mxu1 %v177_v49 }
  0x36   :  { %655 = vmatprep.subr.mxu1 %v745_v25 }
  0x37   :  { %656 = vmatpush3.msra.mxu1 %v184_v50 }
  0x38   :  { %657 = vmatprep.subr.mxu1 %v745_v25 }
  0x39   :  { %658 = vmatpush3.msra.mxu1 %v191_v52 }
  0x3a   :  { %659 = vmatprep.subr.mxu1 %v745_v25 }
  0x3b   :  { %660 = vmatpush3.msra.mxu1 %v198_v53 }
  0x3c   :  { %675 = vmatprep.subr.mxu1 %v745_v25 }
  0x8f   :  { %v27_v54 = vpop.xlane.xlu0 %26  ;;  %v34_v20 = vpop.xlane.xlu1 %33 }
  0x90   :  { %v28_v55 = vmax.f32 %v27_v54, 1e-24  ;;  %v35_v21 = vmax.f32 %v34_v20, 1e-24 }
  0x92   :  { %715 = vrsqrt.f32 %v28_v55 }
  0x93   :  { %717 = vrsqrt.f32 %v35_v21 }
  0x9f   :  { %v716_v56 = vpop.eup %715 }
  0xa0   :  { %v854_v57 = vmul.f32 %v716_v56, %v783_v1  ;;  %v718_v22 = vpop.eup %717 }
  0xa1   :  { %v37_v23 = vmul.f32 %v718_v22, %v778_v0 }
  0xa2   :  { %v67_v58 = vsel %vm24_vm0, %v854_v57, 0 }
  0xa3   :  { %v138_v59 = vand.u32 4294901760, %v67_v58  ;;  %v62_v24 = vmul.f32 %v37_v23, %v854_v57 }
  0xa5   :  { %v139_v60 = vsub.f32 %v67_v58, %v138_v59  ;;  %662 = vmatmul.mubr.f32.vlgmr.msra.gmra.mxu1 %v138_v59 }
  0xa6   :  { %676 = vmatpush3.msra.mxu1 %v94_v34  ;;  %683 = vmatprep.mubr.msk.f32.mxu1 %vm746_vm2, %v745_v25 }
  0xa7   :  { %677 = vmatprep.subr.mxu1 %v745_v25  ;;  %v140_v61 = vand.u32 4294901760, %v139_v60 }
  0xa8   :  { %678 = vmatpush3.msra.mxu1 %v97_v35 }
  0xa9   :  { %679 = vmatprep.subr.mxu1 %v745_v25  ;;  %v141_v62 = vsub.f32 %v139_v60, %v140_v61 }
  0xaa   :  { %680 = vmatpush3.msra.mxu1 %v813_v36 }
  0xab   :  { %681 = vmatprep.subr.mxu1 %v745_v25  ;;  %v142_v63 = vand.u32 4294901760, %v141_v62 }
  0xac   :  { %682 = vmatpush3.msra.mxu1 %v815_v37 }
  0xad   :  { %684 = vmatmul.mubr.f32.vlgmr.msra.gmra.mxu1 %v140_v61  ;;  %697 = vmatprep.subr.mxu1 %v745_v25 }
  0xae   :  { %651 = vmatmul.mubr.f32.vlgmr.msra.gmra.mxu0 %v142_v63  ;;  %698 = vmatpush3.msra.mxu1 %v94_v34 }
  0xaf   :  { %665 = vmatpush3.msra.mxu0 %v817_v38  ;;  %699 = vmatprep.subr.mxu1 %v745_v25 }
  0xb0   :  { %666 = vmatprep.subr.mxu0 %v745_v25  ;;  %700 = vmatpush3.msra.mxu1 %v97_v35 }
  0xb1   :  { %667 = vmatpush3.msra.mxu0 %v819_v39  ;;  %701 = vmatprep.subr.mxu1 %v745_v25 }
  0xb2   :  { %668 = vmatprep.subr.mxu0 %v745_v25  ;;  %702 = vmatpush3.msra.mxu1 %v813_v36 }
  0xb3   :  { %669 = vmatpush3.msra.mxu0 %v822_v40  ;;  %703 = vmatprep.subr.mxu1 %v745_v25 }
  0xb4   :  { %670 = vmatprep.subr.mxu0 %v745_v25  ;;  %672 = vmatprep.mubr.msk.f32.mxu0 %vm746_vm2, %v745_v25 }
  0xb5   :  { %671 = vmatpush3.msra.mxu0 %v825_v41  ;;  %704 = vmatpush3.msra.mxu1 %v815_v37 }
  0xb6   :  { %705 = vmatprep.mubr.msk.f32.mxu1 %vm746_vm2, %v745_v25  ;;  %673 = vmatmul.mubr.f32.vlgmr.msra.gmra.mxu0 %v139_v60 }
  0xb7   :  { %686 = vmatprep.subr.mxu0 %v745_v25  ;;  %706 = vmatmul.mubr.f32.vlgmr.msra.gmra.mxu1 %v138_v59 }
  0xb8   :  { %687 = vmatpush3.msra.mxu0 %v175_v42  ;;  %694 = vmatprep.mubr.msk.f32.mxu0 %vm746_vm2, %v745_v25 }
  0xb9   :  { %688 = vmatprep.subr.mxu0 %v745_v25 }
  0xba   :  { %689 = vmatpush3.msra.mxu0 %v182_v43 }
  0xbb   :  { %690 = vmatprep.subr.mxu0 %v745_v25 }
  0xbc   :  { %691 = vmatpush3.msra.mxu0 %v189_v44 }
  0xbd   :  { %692 = vmatprep.subr.mxu0 %v745_v25  ;;  %v63_v25 = vsel %vm24_vm0, %v62_v24, 0.0 }
  0xbe   :  { %693 = vmatpush3.msra.mxu0 %v196_v45 }
  0xbf   :  { %695 = vmatmul.mubr.f32.vlgmr.msra.gmra.mxu0 %v138_v59 }
 0x165   :  { %v235_v1 = vpop.f32.mrf.mxu1 }
 0x167   :  { %v663_v2 = vpop.f32.mrf.mxu1 }
 0x16d   :  { %v392_v3 = vpop.f32.mrf.mxu1 }
 0x16e   :  { %v144_v4 = vpop.f32.mrf.mxu0 }
 0x16f   :  { %v685_v5 = vpop.f32.mrf.mxu1  ;;  %v236_v9 = vadd.f32 %v235_v1, %v144_v4 }
 0x170   :  { %v652_v6 = vpop.f32.mrf.mxu0 }
 0x176   :  { %v315_v7 = vpop.f32.mrf.mxu0 }
 0x177   :  { %v550_v8 = vpop.f32.mrf.mxu1  ;;  %v316_v12 = vadd.f32 %v315_v7, %v236_v9 }
 0x178   :  { %v674_v10 = vpop.f32.mrf.mxu0 }
 0x179   :  { %v707_v11 = vpop.f32.mrf.mxu1  ;;  %v393_v13 = vadd.f32 %v392_v3, %v316_v12 }
 0x17f   :  { %v475_v14 = vpop.f32.mrf.mxu0 }
 0x180   :  { %v476_v15 = vadd.f32 %v475_v14, %v393_v13 }
 0x181   :  { %v696_v16 = vpop.f32.mrf.mxu0 }
 0x182   :  { %v551_v17 = vadd.f32 %v550_v8, %v476_v15 }
 0x184   :  { %562 = vrot.lane.b32.xlu0 %v551_v17, %s747_s2 }
 0x1f6   :  { %v563_v18 = vpop.permute.xlu0 %562 }
 0x1f7   :  { %v564_v19 = vsel %vm561_vm3, %v563_v18, %v551_v17 }
 0x1f8   :  { %565 = vrot.lane.b32.xlu1 %v564_v19, %s747_s2 }
 0x21c   :  { %64 = vadd.xlane.f32.xlu1 %v63_v25 }
 0x26a   :  { %v566_v26 = vpop.permute.xlu1 %565 }
 0x26b   :  { %v567_v27 = vsel %vm561_vm3, %v566_v26, %v551_v17 }
 0x26c   :  { %570 = vrot.lane.b32.xlu0 %v567_v27, %s748_s25 }
 0x2a5   :  { %v65_v32 = vpop.xlane.xlu1 %64 }
 0x2de   :  { %v571_v31 = vpop.permute.xlu0 %570 }
 0x2df   :  { %v573_v33 = vsel %vm568_vm4, %v571_v31, %v551_v17 }
 0x2e0   :  { %v575_v34 = vsel %vm574_vm5, %v65_v32, %v573_v33 }
 0x2e1   :  { %v576_v35 = vmul.f32 2.0, %v575_v34 }
 0x2e3   :  { %577 = vst.msk [vmem:[#allocation2] sm:$0xff] %vm42_vm1, %v576_v35  ;;  %v578_v0 = vsel %vm42_vm1, %v576_v35, -inf }
 0x2e4   :  { %579 = vmax.xlane.f32.xlu0 %v578_v0 }
 0x36d   :  { %v580_v36 = vpop.xlane.xlu0 %579 }
 0x36e   :  { %v581_v37 = vsub.f32 %v576_v35, %v580_v36 }
 0x370   :  { %v582_v38 = vmul.f32 1.442695, %v581_v37 }
 0x372   :  { %719 = vpow2.f32 %v582_v38 }
 0x37f   :  { %v720_v39 = vpop.eup %719 }
 0x380   :  { %v584_v40 = vsel %vm42_vm1, %v720_v39, 0.0 }
 0x381   :  { %585 = vadd.xlane.f32.xlu1 %v584_v40 }
 0x382   :  { %734 = shalt.err (!%p731_p4)
}
 0x383   :  { %603 = dma.vmem_to_hbm [thread:$0]  %s601_s27, 128, %s911_s3, [#allocation3]   ;;  %v590_v44 = vmul.f32 2.0, %v65_v32  ;;  %vm592_vm6 = vcmask 7168  }
 0x40a   :  { %v586_v41 = vpop.xlane.xlu1 %585 }
 0x40b   :  { %721 = vlog2.f32 %v586_v41 }
 0x418   :  { %v722_v42 = vpop.eup %721 }
 0x419   :  { %v588_v43 = vmul.f32 0.6931472, %v722_v42 }
 0x41b   :  { %v589_v45 = vadd.f32 %v588_v43, %v580_v36 }
 0x41d   :  { %v591_v46 = vsub.f32 %v589_v45, %v590_v44 }
 0x41f   :  { %593 = vst.msk [vmem:[%s912_s4] sm:$0xff] %vm592_vm6, %v591_v46 }
 0x420   :  { %743 = dma.done.wait [#allocation3], 128  }
 0x421   :  { %744 = vsyncadd [#allocation3], 4294967168 }
 0x422   :  { %611 = vsyncpa [#allocation3], 1 }

</bundles_post_ra>
